<compile_context>
chip_gen: v5e
topology: v5e:2x2
jax: 0.10.0
libtpu: 0.0.40
codegen_flags: <defaults>
</compile_context>

<pallas_src>
import functools
import math

import jax
import jax.numpy as jnp
from jax.experimental import pallas as pl
from jax.experimental.pallas import tpu as pltpu


def _round_up(n, m):
    return ((n + m - 1) // m) * m


def _polynomial3_kernel(x_ref, theta_ref, p0_ref, out_ref, *, c_log, nearfield):
    """x_ref: (2, TN) f32 VMEM; theta_ref: (2,) f32 SMEM; p0_ref: (1,) f32 SMEM;
    out_ref: (1, TN) f32 VMEM."""
    x = x_ref[...]                        # (2, TN)
    t0 = theta_ref[0]                     # SMEM scalars, read once per tile
    t1 = theta_ref[1]
    p0 = p0_ref[0]

    d0 = x[0:1, :] - t0                   # (1, TN)  pure VPU
    d1 = x[1:2, :] - t1                   # (1, TN)
    sq = d0 * d0 + d1 * d1                # (1, TN)  squared L2 norm (no XLU reduce)

    # gamma*10*log10(sqrt(sq)) == (gamma*5/ln10) * log(sq); a single EUP op.
    L = c_log * jnp.log(sq)               # (1, TN)

    # fobs = P0 - max(L, nearfield) == min(P0 - L, P0 - nearfield)
    clamp_val = p0 - nearfield            # scalar
    out_ref[...] = jnp.minimum(p0 - L, clamp_val)


def polynomial3_forward(x, theta, p0, *, gamma=2.0, tile_n=65536):
    """x: (N, 2) f32; theta: (2,) f32; p0: scalar f32 -> (N, 1) f32."""
    N, D = x.shape
    assert D == 2, "Polynomial3 expects 2-D coordinates"

    x_t = jnp.transpose(x.astype(jnp.float32))           # (2, N) lane-dense
    theta_1d = jnp.reshape(theta, (2,)).astype(jnp.float32)
    p0_1d = jnp.reshape(p0, (1,)).astype(jnp.float32)

    # Choose a lane tile (multiple of 128) and pad N up to a whole number of tiles.
    if N <= tile_n:
        tn = _round_up(max(N, 1), 128)
        n_pad = tn
    else:
        tn = _round_up(tile_n, 128)
        n_pad = _round_up(N, tn)
    if n_pad != N:
        # Zero padding is safe: sq=0 -> log -> -inf -> +inf -> clamped finite;
        # padded lanes are sliced off below anyway.
        x_t = jnp.pad(x_t, ((0, 0), (0, n_pad - N)))

    c_log = float(gamma) * 5.0 / math.log(10.0)
    nearfield = float(gamma) * 10.0 * math.log10(math.pi)
    kernel = functools.partial(_polynomial3_kernel, c_log=c_log, nearfield=nearfield)

    out = pl.pallas_call(
        kernel,
        out_shape=jax.ShapeDtypeStruct((1, n_pad), jnp.float32),
        grid=(n_pad // tn,),
        in_specs=[
            pl.BlockSpec((2, tn), lambda i: (0, i)),                  # x tile (VMEM)
            pl.BlockSpec(memory_space=pltpu.MemorySpace.SMEM),        # theta scalars
            pl.BlockSpec(memory_space=pltpu.MemorySpace.SMEM),        # P0 scalar
        ],
        out_specs=pl.BlockSpec((1, tn), lambda i: (0, i)),
        compiler_params=pltpu.CompilerParams(
            dimension_semantics=("parallel",)),
    )(x_t, theta_1d, p0_1d)

    # (1, n_pad) slice -> (N,) -> (N, 1); contiguous reshape, no data movement.
    return out[0, :N].reshape(N, 1)


def _reference(x, theta, p0, gamma=2.0):
    L = gamma * 10.0 * jnp.log10(jnp.linalg.norm(x - theta[None, :], axis=1))
    nearfield = gamma * 10.0 * math.log10(math.pi)
    L = jnp.maximum(L, nearfield)
    return p0 - L[:, None]


if __name__ == "__main__":
    key = jax.random.PRNGKey(0)
    k_x, k_p0, k_x2 = jax.random.split(key, 3)

    gamma = 2.0

    # --- Test 1: module defaults (theta = zeros(2), P0 = randn(())), N=8 ---
    N, D = 8, 2
    x = jax.random.uniform(k_x, (N, D), jnp.float32, minval=0.5, maxval=10.0)
    theta = jnp.zeros((D,), jnp.float32)
    p0 = jax.random.normal(k_p0, (), jnp.float32)

    out = jax.block_until_ready(polynomial3_forward(x, theta, p0, gamma=gamma))
    ref = _reference(x, theta, p0, gamma=gamma)
    assert out.shape == (N, 1)
    assert jnp.allclose(out, ref, atol=1e-5, rtol=1e-5)

    # --- Test 2: non-zero theta, N not a multiple of 128, multi-tile grid ---
    N2 = 300
    x2 = jax.random.uniform(k_x2, (N2, D), jnp.float32, minval=-10.0, maxval=10.0)
    theta2 = jnp.array([0.3, -0.2], jnp.float32)
    out2 = jax.block_until_ready(
        polynomial3_forward(x2, theta2, p0, gamma=gamma, tile_n=128))
    ref2 = _reference(x2, theta2, p0, gamma=gamma)
    assert out2.shape == (N2, 1)
    assert jnp.allclose(out2, ref2, atol=1e-4, rtol=1e-5)

    print("KERNEL_OK")
</pallas_src>

<mosaic_0001>
module attributes {stable_mosaic.version = 11 : i64} {
  func.func @_polynomial3_kernel(%arg0: i32, %arg1: memref<2x128xf32, #tpu.memory_space<vmem>>, %arg2: memref<2xf32, #tpu.memory_space<smem>>, %arg3: memref<1xf32, #tpu.memory_space<smem>>, %arg4: memref<1x128xf32, #tpu.memory_space<vmem>>) attributes {dimension_semantics = [#tpu.dimension_semantics<parallel>], iteration_bounds = array<i64: 1>, scalar_prefetch = 0 : i64, scratch_operands = 0 : i64, tpu.core_type = #tpu.core_type<tc>, window_params = [{transform_indices = @transform_0, window_bounds = array<i64: 2, 128>}, {transform_indices = @transform_1, window_bounds = array<i64: 2>}, {transform_indices = @transform_2, window_bounds = array<i64: 1>}, {transform_indices = @transform_3, window_bounds = array<i64: 1, 128>}]} {
    %c0 = arith.constant 0 : index
    %c0_0 = arith.constant 0 : index
    %0 = vector.load %arg1[%c0, %c0_0] : memref<2x128xf32, #tpu.memory_space<vmem>>, vector<2x128xf32>
    %c0_1 = arith.constant 0 : index
    %1 = memref.load %arg2[%c0_1] : memref<2xf32, #tpu.memory_space<smem>>
    %c1 = arith.constant 1 : index
    %2 = memref.load %arg2[%c1] : memref<2xf32, #tpu.memory_space<smem>>
    %c0_2 = arith.constant 0 : index
    %3 = memref.load %arg3[%c0_2] : memref<1xf32, #tpu.memory_space<smem>>
    %4 = vector.extract_strided_slice %0 {offsets = [0, 0], sizes = [1, 128], strides = [1, 1]} : vector<2x128xf32> to vector<1x128xf32>
    %5 = vector.broadcast %1 : f32 to vector<1x128xf32>
    %6 = arith.subf %4, %5 : vector<1x128xf32>
    %7 = vector.extract_strided_slice %0 {offsets = [1, 0], sizes = [1, 128], strides = [1, 1]} : vector<2x128xf32> to vector<1x128xf32>
    %8 = vector.broadcast %2 : f32 to vector<1x128xf32>
    %9 = arith.subf %7, %8 : vector<1x128xf32>
    %10 = arith.mulf %6, %6 : vector<1x128xf32>
    %11 = arith.mulf %9, %9 : vector<1x128xf32>
    %12 = arith.addf %10, %11 : vector<1x128xf32>
    %13 = math.log %12 : vector<1x128xf32>
    %cst = arith.constant 4.34294462 : f32
    %14 = vector.broadcast %cst : f32 to vector<1x128xf32>
    %15 = arith.mulf %14, %13 : vector<1x128xf32>
    %cst_3 = arith.constant 9.94299697 : f32
    %16 = arith.subf %3, %cst_3 : f32
    %17 = vector.broadcast %3 : f32 to vector<1x128xf32>
    %18 = arith.subf %17, %15 : vector<1x128xf32>
    %19 = vector.broadcast %16 : f32 to vector<1x128xf32>
    %20 = arith.minimumf %18, %19 : vector<1x128xf32>
    %c0_4 = arith.constant 0 : index
    %c0_5 = arith.constant 0 : index
    %21 = vector.load %arg4[%c0_4, %c0_5] : memref<1x128xf32, #tpu.memory_space<vmem>>, vector<1x128xf32>
    tpu.vector_store %arg4[%c0_4, %c0_5], %20 {strides = array<i32>} : memref<1x128xf32, #tpu.memory_space<vmem>>, vector<1x128xf32>,
    return
  }
  func.func @transform_0(%arg0: i32) -> (i32, i32) {
    %c0_i32 = arith.constant 0 : i32
    %c0_i32_0 = arith.constant 0 : i32
    return %c0_i32, %arg0 : i32, i32
  }
  func.func @transform_1(%arg0: i32) -> i32 {
    %c0_i32 = arith.constant 0 : i32
    %c0_i32_0 = arith.constant 0 : i32
    return %c0_i32 : i32
  }
  func.func @transform_2(%arg0: i32) -> i32 {
    %c0_i32 = arith.constant 0 : i32
    %c0_i32_0 = arith.constant 0 : i32
    return %c0_i32 : i32
  }
  func.func @transform_3(%arg0: i32) -> (i32, i32) {
    %c0_i32 = arith.constant 0 : i32
    %c0_i32_0 = arith.constant 0 : i32
    return %c0_i32, %arg0 : i32, i32
  }
}

</mosaic_0001>

<bundles_post_ra>
// kernel: tpu_custom_call.1
= control target key start
LH: loop header
LB: loop body
LE: loop exit
PB: predicated region body
PF: predicated region fallthrough
CT: control target
= control target key end

     0   :  { %9 = vsyncpa [#allocation5], 0  ;;  %s152_s0 = inlined_call_operand.vmem [shape: f32[2,128], index: 0, kind: input, shape index: {}]   ;;  %s153_s1 = inlined_call_operand.hbm [shape: f32[2], index: 1, kind: input, shape index: {}]   ;;  %s154_s2 = inlined_call_operand.<no memory space> [shape: f32[1], index: 2, kind: input, shape index: {}]   ;;  %s155_s3 = inlined_call_operand.hbm [shape: f32[1,128], index: 3, kind: output, shape index: {}]  }
   0x1   :  { %10 = vsyncpa [#allocation4], 0  ;;  %s18_s14 = sshll.u32 %s153_s1, 4  ;;  %s115_s15 = smov [#allocation3]   ;;  %s19_s14 = int_to_ptr.hbm [resolvable:$true] %s18_s14 }
   0x2   :  { %21 = dma.hbm_to_smem %s19_s14, 16, %s115_s15, [#allocation5]  }
   0x3   :  { %111 = dma.done.wait [#allocation5], 16  }
   0x4   :  { %112 = vsyncadd [#allocation5], 4294967280 }
   0x5   :  { %28 = sfence }
   0x6   :  { %s30_s16 = sld [smem:[#allocation3]]  ;;  %v29_v0 = vld [vmem:[%s152_s0] sm:$0x3]  ;;  %v47_v11 = vstv %s154_s2  ;;  %s116_s0 = smov [#allocation6]  }
   0x7   :  { %s69_s17 = sld [smem:[#allocation3 + $0x1]]  ;;  %s57_s24 = sshll.u32 %s116_s0, 4  ;;  %s58_s24 = int_to_ptr.vmem [resolvable:$true] %s57_s24 }
   0x8   :  { %s70_s21 = sadd.f32 -9.942997, %s154_s2  ;;  %s59_s27 = sshll.u32 %s155_s3, 4  ;;  %s60_s27 = int_to_ptr.hbm [resolvable:$true] %s59_s27 }
   0xa   :  { %v49_v13 = vstv %s70_s21 }
   0xc   :  { %v33_v1 = vstv %s30_s16 }
   0xd   :  { %v34_v2 = vsub.f32 %v29_v0, %v33_v1  ;;  %v35_v3 = vstv %s69_s17 }
   0xe   :  { %v36_v4 = vsub.f32 %v29_v0, %v35_v3 }
   0xf   :  { %v37_v5 = vmul.f32 %v34_v2, %v34_v2 }
  0x10   :  { %v38_v6 = vmul.f32 %v36_v4, %v36_v4 }
  0x12   :  { %v40_v7 = vrot.slane %v38_v6, 1 }
  0x14   :  { %v42_v8 = vadd.f32 %v40_v7, %v37_v5 }
  0x16   :  { %73 = vlog2.f32 %v42_v8 }
  0x1c   :  { %v74_v9 = vpop.eup %73 }
  0x1d   :  { %v44_v10 = vmul.f32 0.6931472, %v74_v9 }
  0x1f   :  { %v45_v12 = vmul.f32 4.3429446, %v44_v10 }
  0x21   :  { %v48_v14 = vsub.f32 %v47_v11, %v45_v12 }
  0x23   :  { %v50_v15 = vmin.f32 %v48_v14, %v49_v13 }
  0x25   :  { %51 = vst [vmem:[#allocation6] sm:$0x1] %v50_v15 }
  0x26   :  { %62 = dma.vmem_to_hbm [thread:$0]  %s58_s24, 16, %s60_s27, [#allocation4]  }
  0x27   :  { %113 = dma.done.wait [#allocation4], 16  }
  0x28   :  { %114 = vsyncadd [#allocation4], 4294967280 }
  0x29   :  { %67 = vsyncpa [#allocation4], 1 }
  0x2a   :  { %68 = vsyncpa [#allocation5], 1 }

</bundles_post_ra>
